<compile_context>
chip_gen: v7x
topology: tpu7x:2x2x1
jax: 0.10.0
libtpu: 0.0.40
codegen_flags: <defaults>
</compile_context>

<pallas_src>
import jax
import jax.numpy as jnp
from jax.experimental import pallas as pl
from jax.experimental.pallas import tpu as pltpu

# ----------------------------- hyperparameters -----------------------------
VOCAB       = 50
EMB_SIZE    = 32            # EmbSize == BiLSTMInputSize
LSTM_HIDDEN = 32            # BiLSTMHiddenSize
DNN_INPUT   = 2 * LSTM_HIDDEN   # DNNInputSize (fwd + bwd concat)
DNN_HIDDEN  = 32            # DNNHiddenSize
NUM_CLASSES = 2             # TwoClassify
BATCH       = 8
SEQ         = 8
# TODO(synk): BiLSTMDropout / DNNDropout are identity at inference; not modeled.
# TODO(synk): DNN input assumed to be h_n concat (final hidden of each
#             direction); if the reference DNN consumes output[:, -1, :]
#             instead, the backward half differs.


def _bilstm_dnn_kernel(x_ref, wih_ref, whh_ref, b_ref,
                       w1_ref, b1_ref, w2_ref, b2_ref, out_ref):
    """Fused BiLSTM recurrence + DNN head; all tensors resident in VMEM.

    x_ref  : (T*B, 2E) bf16   row t*B+b = [emb(x[b, t]) | emb(x[b, T-1-t])]
    wih_ref: (2E, 8H)  bf16   block input weights, gate-major/dir-minor cols
                              (sigmoid-gate columns pre-scaled by 0.5)
    whh_ref: (2H, 8H)  bf16   block-diagonal recurrent weights (same scaling)
    b_ref  : (1, 8H)   f32    fused biases (b_ih + b_hh), same order/scaling
    w1_ref : (2H, DH)  bf16 ; b1_ref (1, DH) f32
    w2_ref : (DH, C)   bf16 ; b2_ref (1, C)  f32
    """
    B = out_ref.shape[0]
    TB = x_ref.shape[0]
    T = TB // B
    H2, G = whh_ref.shape            # (2H, 8H)
    H = H2 // 2

    # ---- input projection: all timesteps & both directions in one matmul ----
    gx = jnp.dot(x_ref[...], wih_ref[...],
                 preferred_element_type=jnp.float32) + b_ref[...]   # (T*B, 8H)

    # Cell-candidate ("g") gate columns live in [4H, 6H); the rest are the
    # sigmoid gates whose pre-activations arrive pre-scaled by 0.5.
    lane = jax.lax.broadcasted_iota(jnp.int32, (B, G), 1)
    g_mask = (lane >= 4 * H) & (lane < 6 * H)

    whh = whh_ref[...]               # (2H, 8H) bf16, hoisted out of the loop

    # ---- fused fwd+bwd recurrence; carry = [h_fwd|h_bwd], [c_fwd|c_bwd] ----
    h = jnp.zeros((B, H2), jnp.float32)
    c = jnp.zeros((B, H2), jnp.float32)
    for t in range(T):               # static unroll, T is small
        gates = gx[t * B:(t + 1) * B, :]            # (B, 8H) f32, static slice
        if t > 0:                                   # h == 0 at t == 0
            gates = gates + jnp.dot(h.astype(jnp.bfloat16), whh,
                                    preferred_element_type=jnp.float32)
        th = jnp.tanh(gates)                        # single full-width EUP pass
        act = jnp.where(g_mask, th, 0.5 * th + 0.5)  # sigmoid via tanh identity
        i_g = act[:, 0 * H2:1 * H2]                 # [i_f | i_b]
        f_g = act[:, 1 * H2:2 * H2]                 # [f_f | f_b]
        g_g = act[:, 2 * H2:3 * H2]                 # [g_f | g_b]
        o_g = act[:, 3 * H2:4 * H2]                 # [o_f | o_b]
        c = f_g * c + i_g * g_g
        h = o_g * jnp.tanh(c)

    # h == [h_fwd_final | h_bwd_final]  (B, 2H) — already the DNN input layout.
    hidden = jnp.maximum(
        jnp.dot(h.astype(jnp.bfloat16), w1_ref[...],
                preferred_element_type=jnp.float32) + b1_ref[...], 0.0)
    logits = jnp.dot(hidden.astype(jnp.bfloat16), w2_ref[...],
                     preferred_element_type=jnp.float32) + b2_ref[...]
    out_ref[...] = logits.astype(out_ref.dtype)


# ------------------------- wrapper-side weight fusion -------------------------
def _fuse_directions(w_f, w_b, H):
    """torch (4H, n_in) fwd/bwd weights -> (2*n_in, 8H) block matrix.

    Column order: [i_f, i_b, f_f, f_b, g_f, g_b, o_f, o_b] (each H wide).
    Rows 0:n_in feed the forward gates only; rows n_in:2*n_in feed the
    backward gates only (off-diagonal blocks are zero)."""
    wf, wb = w_f.T, w_b.T                       # (n_in, 4H) each
    n_in = wf.shape[0]
    z = jnp.zeros((n_in, H), wf.dtype)
    blocks = []
    for g in range(4):
        blocks.append(jnp.concatenate([wf[:, g * H:(g + 1) * H], z], axis=0))
        blocks.append(jnp.concatenate([z, wb[:, g * H:(g + 1) * H]], axis=0))
    return jnp.concatenate(blocks, axis=1)      # (2*n_in, 8H)


def _fuse_bias(b_f, b_b, H):
    pieces = []
    for g in range(4):
        pieces.append(b_f[g * H:(g + 1) * H])
        pieces.append(b_b[g * H:(g + 1) * H])
    return jnp.concatenate(pieces).reshape(1, 8 * H)


def _sigmoid_halving_scale(H):
    """Per-column scale: 0.5 on sigmoid-gate columns (i, f, o), 1.0 on g.

    Lets the kernel implement sigmoid(z) = 0.5*tanh(z/2) + 0.5 with a single
    full-width tanh (exact scaling: 0.5 only changes the exponent)."""
    col = jnp.arange(8 * H)
    return jnp.where((col >= 4 * H) & (col < 6 * H), 1.0, 0.5).astype(jnp.float32)


def bilstm_dnn_two_classify(x_ids, params):
    """x_ids: (B, T) int32 token ids -> (B, 2) float32 logits."""
    B, T = x_ids.shape
    H = LSTM_HIDDEN

    # --- Embedding lookup (plain-JAX glue) ---
    x_emb = jnp.take(params["emb"], x_ids, axis=0).astype(jnp.float32)   # (B,T,E)
    # Pack [token t | token T-1-t] so one matmul projects both directions,
    # then go time-major so the kernel's per-step slice is contiguous rows.
    x_both = jnp.concatenate([x_emb, x_emb[:, ::-1, :]], axis=-1)        # (B,T,2E)
    x_flat = (x_both.transpose(1, 0, 2)
              .reshape(T * B, 2 * EMB_SIZE).astype(jnp.bfloat16))        # (T*B,2E)

    scale = _sigmoid_halving_scale(H)                                    # (8H,)
    wih = (_fuse_directions(params["wih_f"], params["wih_b"], H)
           * scale[None, :]).astype(jnp.bfloat16)
    whh = (_fuse_directions(params["whh_f"], params["whh_b"], H)
           * scale[None, :]).astype(jnp.bfloat16)
    b = _fuse_bias(params["bih_f"] + params["bhh_f"],
                   params["bih_b"] + params["bhh_b"], H) * scale[None, :]  # (1,8H) f32

    kernel_inputs = (
        x_flat, wih, whh, b,
        params["w1"].T.astype(jnp.bfloat16), params["b1"].reshape(1, -1),
        params["w2"].T.astype(jnp.bfloat16), params["b2"].reshape(1, -1),
    )

    vmem = pltpu.MemorySpace.VMEM
    return pl.pallas_call(
        _bilstm_dnn_kernel,
        out_shape=jax.ShapeDtypeStruct((B, NUM_CLASSES), jnp.float32),
        in_specs=[pl.BlockSpec(memory_space=vmem)] * len(kernel_inputs),
        out_specs=pl.BlockSpec(memory_space=vmem),
    )(*kernel_inputs)


def init_params(key):
    """Deterministic synthetic parameter init (shapes follow the torch module)."""
    ks = jax.random.split(key, 16)
    s = 0.1
    H, E, DH, DI = LSTM_HIDDEN, EMB_SIZE, DNN_HIDDEN, DNN_INPUT
    return {
        "emb":   s * jax.random.normal(ks[0], (VOCAB, E), jnp.float32),
        # forward-direction LSTM (PyTorch layout: weight_ih (4H,E), weight_hh (4H,H))
        "wih_f": s * jax.random.normal(ks[1], (4 * H, E), jnp.float32),
        "whh_f": s * jax.random.normal(ks[2], (4 * H, H), jnp.float32),
        "bih_f": s * jax.random.normal(ks[3], (4 * H,), jnp.float32),
        "bhh_f": s * jax.random.normal(ks[4], (4 * H,), jnp.float32),
        # backward-direction LSTM
        "wih_b": s * jax.random.normal(ks[5], (4 * H, E), jnp.float32),
        "whh_b": s * jax.random.normal(ks[6], (4 * H, H), jnp.float32),
        "bih_b": s * jax.random.normal(ks[7], (4 * H,), jnp.float32),
        "bhh_b": s * jax.random.normal(ks[8], (4 * H,), jnp.float32),
        # DNN head
        "w1": s * jax.random.normal(ks[9],  (DH, DI), jnp.float32),
        "b1": s * jax.random.normal(ks[10], (DH,), jnp.float32),
        "w2": s * jax.random.normal(ks[11], (NUM_CLASSES, DH), jnp.float32),
        "b2": s * jax.random.normal(ks[12], (NUM_CLASSES,), jnp.float32),
    }


if __name__ == "__main__":
    key = jax.random.PRNGKey(0)
    k_param, k_data = jax.random.split(key)
    params = init_params(k_param)
    x_ids = jax.random.randint(k_data, (BATCH, SEQ), 0, VOCAB, dtype=jnp.int32)

    logits = bilstm_dnn_two_classify(x_ids, params)
    jax.block_until_ready(logits)
    assert logits.shape == (BATCH, NUM_CLASSES)
    assert logits.dtype == jnp.float32
    assert bool(jnp.all(jnp.isfinite(logits)))
    print("KERNEL_OK")
</pallas_src>

<mosaic_0001>
module attributes {stable_mosaic.version = 11 : i64} {
  func.func @_bilstm_dnn_kernel(%arg0: memref<64x64xbf16, #tpu.memory_space<vmem>>, %arg1: memref<64x256xbf16, #tpu.memory_space<vmem>>, %arg2: memref<64x256xbf16, #tpu.memory_space<vmem>>, %arg3: memref<1x256xf32, #tpu.memory_space<vmem>>, %arg4: memref<64x32xbf16, #tpu.memory_space<vmem>>, %arg5: memref<1x32xf32, #tpu.memory_space<vmem>>, %arg6: memref<32x2xbf16, #tpu.memory_space<vmem>>, %arg7: memref<1x2xf32, #tpu.memory_space<vmem>>, %arg8: memref<8x2xf32, #tpu.memory_space<vmem>>) attributes {dimension_semantics = [], scalar_prefetch = 0 : i64, scratch_operands = 0 : i64, tpu.core_type = #tpu.core_type<tc>} {
    %c0 = arith.constant 0 : index
    %c0_0 = arith.constant 0 : index
    %0 = vector.load %arg0[%c0, %c0_0] : memref<64x64xbf16, #tpu.memory_space<vmem>>, vector<64x64xbf16>
    %c0_1 = arith.constant 0 : index
    %c0_2 = arith.constant 0 : index
    %1 = vector.load %arg1[%c0_1, %c0_2] : memref<64x256xbf16, #tpu.memory_space<vmem>>, vector<64x256xbf16>
    %cst = arith.constant dense<0.000000e+00> : vector<64x256xf32>
    %2 = tpu.matmul %0, %1, %cst {dimension_numbers = #tpu.dot_dimension_numbers<[1], [0], [0], [1], [0, 0, 1, 1], [], []>} : vector<64x64xbf16>, vector<64x256xbf16>, vector<64x256xf32> -> vector<64x256xf32>
    %c0_3 = arith.constant 0 : index
    %c0_4 = arith.constant 0 : index
    %3 = vector.load %arg3[%c0_3, %c0_4] : memref<1x256xf32, #tpu.memory_space<vmem>>, vector<1x256xf32>
    %4 = vector.broadcast %3 : vector<1x256xf32> to vector<64x256xf32>
    %5 = arith.addf %2, %4 : vector<64x256xf32>
    %6 = tpu.iota {dimensions = array<i32: 1>} : vector<8x256xi32>
    %c128_i32 = arith.constant 128 : i32
    %7 = vector.broadcast %c128_i32 : i32 to vector<8x256xi32>
    %8 = arith.cmpi sge, %6, %7 : vector<8x256xi32>
    %c192_i32 = arith.constant 192 : i32
    %9 = vector.broadcast %c192_i32 : i32 to vector<8x256xi32>
    %10 = arith.cmpi slt, %6, %9 : vector<8x256xi32>
    %11 = arith.andi %8, %10 : vector<8x256xi1>
    %c0_5 = arith.constant 0 : index
    %c0_6 = arith.constant 0 : index
    %12 = vector.load %arg2[%c0_5, %c0_6] : memref<64x256xbf16, #tpu.memory_space<vmem>>, vector<64x256xbf16>
    %cst_7 = arith.constant 0.000000e+00 : f32
    %13 = vector.broadcast %cst_7 : f32 to vector<8x64xf32>
    %14 = vector.extract_strided_slice %5 {offsets = [0, 0], sizes = [8, 256], strides = [1, 1]} : vector<64x256xf32> to vector<8x256xf32>
    %15 = math.tanh %14 : vector<8x256xf32>
    %cst_8 = arith.constant 5.000000e-01 : f32
    %16 = vector.broadcast %cst_8 : f32 to vector<8x256xf32>
    %17 = arith.mulf %16, %15 : vector<8x256xf32>
    %cst_9 = arith.constant 5.000000e-01 : f32
    %18 = vector.broadcast %cst_9 : f32 to vector<8x256xf32>
    %19 = arith.addf %17, %18 : vector<8x256xf32>
    %20 = arith.select %11, %15, %19 : vector<8x256xi1>, vector<8x256xf32>
    %21 = vector.extract_strided_slice %20 {offsets = [0, 0], sizes = [8, 64], strides = [1, 1]} : vector<8x256xf32> to vector<8x64xf32>
    %22 = vector.extract_strided_slice %20 {offsets = [0, 64], sizes = [8, 64], strides = [1, 1]} : vector<8x256xf32> to vector<8x64xf32>
    %23 = vector.extract_strided_slice %20 {offsets = [0, 128], sizes = [8, 64], strides = [1, 1]} : vector<8x256xf32> to vector<8x64xf32>
    %24 = vector.extract_strided_slice %20 {offsets = [0, 192], sizes = [8, 64], strides = [1, 1]} : vector<8x256xf32> to vector<8x64xf32>
    %25 = arith.mulf %22, %13 : vector<8x64xf32>
    %26 = arith.mulf %21, %23 : vector<8x64xf32>
    %27 = arith.addf %25, %26 : vector<8x64xf32>
    %28 = math.tanh %27 : vector<8x64xf32>
    %29 = arith.mulf %24, %28 : vector<8x64xf32>
    %30 = vector.extract_strided_slice %5 {offsets = [8, 0], sizes = [8, 256], strides = [1, 1]} : vector<64x256xf32> to vector<8x256xf32>
    %31 = arith.truncf %29 : vector<8x64xf32> to vector<8x64xbf16>
    %cst_10 = arith.constant dense<0.000000e+00> : vector<8x256xf32>
    %32 = tpu.matmul %31, %12, %cst_10 {dimension_numbers = #tpu.dot_dimension_numbers<[1], [0], [0], [1], [0, 0, 1, 1], [], []>} : vector<8x64xbf16>, vector<64x256xbf16>, vector<8x256xf32> -> vector<8x256xf32>
    %33 = arith.addf %30, %32 : vector<8x256xf32>
    %34 = math.tanh %33 : vector<8x256xf32>
    %cst_11 = arith.constant 5.000000e-01 : f32
    %35 = vector.broadcast %cst_11 : f32 to vector<8x256xf32>
    %36 = arith.mulf %35, %34 : vector<8x256xf32>
    %cst_12 = arith.constant 5.000000e-01 : f32
    %37 = vector.broadcast %cst_12 : f32 to vector<8x256xf32>
    %38 = arith.addf %36, %37 : vector<8x256xf32>
    %39 = arith.select %11, %34, %38 : vector<8x256xi1>, vector<8x256xf32>
    %40 = vector.extract_strided_slice %39 {offsets = [0, 0], sizes = [8, 64], strides = [1, 1]} : vector<8x256xf32> to vector<8x64xf32>
    %41 = vector.extract_strided_slice %39 {offsets = [0, 64], sizes = [8, 64], strides = [1, 1]} : vector<8x256xf32> to vector<8x64xf32>
    %42 = vector.extract_strided_slice %39 {offsets = [0, 128], sizes = [8, 64], strides = [1, 1]} : vector<8x256xf32> to vector<8x64xf32>
    %43 = vector.extract_strided_slice %39 {offsets = [0, 192], sizes = [8, 64], strides = [1, 1]} : vector<8x256xf32> to vector<8x64xf32>
    %44 = arith.mulf %41, %27 : vector<8x64xf32>
    %45 = arith.mulf %40, %42 : vector<8x64xf32>
    %46 = arith.addf %44, %45 : vector<8x64xf32>
    %47 = math.tanh %46 : vector<8x64xf32>
    %48 = arith.mulf %43, %47 : vector<8x64xf32>
    %49 = vector.extract_strided_slice %5 {offsets = [16, 0], sizes = [8, 256], strides = [1, 1]} : vector<64x256xf32> to vector<8x256xf32>
    %50 = arith.truncf %48 : vector<8x64xf32> to vector<8x64xbf16>
    %cst_13 = arith.constant dense<0.000000e+00> : vector<8x256xf32>
    %51 = tpu.matmul %50, %12, %cst_13 {dimension_numbers = #tpu.dot_dimension_numbers<[1], [0], [0], [1], [0, 0, 1, 1], [], []>} : vector<8x64xbf16>, vector<64x256xbf16>, vector<8x256xf32> -> vector<8x256xf32>
    %52 = arith.addf %49, %51 : vector<8x256xf32>
    %53 = math.tanh %52 : vector<8x256xf32>
    %cst_14 = arith.constant 5.000000e-01 : f32
    %54 = vector.broadcast %cst_14 : f32 to vector<8x256xf32>
    %55 = arith.mulf %54, %53 : vector<8x256xf32>
    %cst_15 = arith.constant 5.000000e-01 : f32
    %56 = vector.broadcast %cst_15 : f32 to vector<8x256xf32>
    %57 = arith.addf %55, %56 : vector<8x256xf32>
    %58 = arith.select %11, %53, %57 : vector<8x256xi1>, vector<8x256xf32>
    %59 = vector.extract_strided_slice %58 {offsets = [0, 0], sizes = [8, 64], strides = [1, 1]} : vector<8x256xf32> to vector<8x64xf32>
    %60 = vector.extract_strided_slice %58 {offsets = [0, 64], sizes = [8, 64], strides = [1, 1]} : vector<8x256xf32> to vector<8x64xf32>
    %61 = vector.extract_strided_slice %58 {offsets = [0, 128], sizes = [8, 64], strides = [1, 1]} : vector<8x256xf32> to vector<8x64xf32>
    %62 = vector.extract_strided_slice %58 {offsets = [0, 192], sizes = [8, 64], strides = [1, 1]} : vector<8x256xf32> to vector<8x64xf32>
    %63 = arith.mulf %60, %46 : vector<8x64xf32>
    %64 = arith.mulf %59, %61 : vector<8x64xf32>
    %65 = arith.addf %63, %64 : vector<8x64xf32>
    %66 = math.tanh %65 : vector<8x64xf32>
    %67 = arith.mulf %62, %66 : vector<8x64xf32>
    %68 = vector.extract_strided_slice %5 {offsets = [24, 0], sizes = [8, 256], strides = [1, 1]} : vector<64x256xf32> to vector<8x256xf32>
    %69 = arith.truncf %67 : vector<8x64xf32> to vector<8x64xbf16>
    %cst_16 = arith.constant dense<0.000000e+00> : vector<8x256xf32>
    %70 = tpu.matmul %69, %12, %cst_16 {dimension_numbers = #tpu.dot_dimension_numbers<[1], [0], [0], [1], [0, 0, 1, 1], [], []>} : vector<8x64xbf16>, vector<64x256xbf16>, vector<8x256xf32> -> vector<8x256xf32>
    %71 = arith.addf %68, %70 : vector<8x256xf32>
    %72 = math.tanh %71 : vector<8x256xf32>
    %cst_17 = arith.constant 5.000000e-01 : f32
    %73 = vector.broadcast %cst_17 : f32 to vector<8x256xf32>
    %74 = arith.mulf %73, %72 : vector<8x256xf32>
    %cst_18 = arith.constant 5.000000e-01 : f32
    %75 = vector.broadcast %cst_18 : f32 to vector<8x256xf32>
    %76 = arith.addf %74, %75 : vector<8x256xf32>
    %77 = arith.select %11, %72, %76 : vector<8x256xi1>, vector<8x256xf32>
    %78 = vector.extract_strided_slice %77 {offsets = [0, 0], sizes = [8, 64], strides = [1, 1]} : vector<8x256xf32> to vector<8x64xf32>
    %79 = vector.extract_strided_slice %77 {offsets = [0, 64], sizes = [8, 64], strides = [1, 1]} : vector<8x256xf32> to vector<8x64xf32>
    %80 = vector.extract_strided_slice %77 {offsets = [0, 128], sizes = [8, 64], strides = [1, 1]} : vector<8x256xf32> to vector<8x64xf32>
    %81 = vector.extract_strided_slice %77 {offsets = [0, 192], sizes = [8, 64], strides = [1, 1]} : vector<8x256xf32> to vector<8x64xf32>
    %82 = arith.mulf %79, %65 : vector<8x64xf32>
    %83 = arith.mulf %78, %80 : vector<8x64xf32>
    %84 = arith.addf %82, %83 : vector<8x64xf32>
    %85 = math.tanh %84 : vector<8x64xf32>
    %86 = arith.mulf %81, %85 : vector<8x64xf32>
    %87 = vector.extract_strided_slice %5 {offsets = [32, 0], sizes = [8, 256], strides = [1, 1]} : vector<64x256xf32> to vector<8x256xf32>
    %88 = arith.truncf %86 : vector<8x64xf32> to vector<8x64xbf16>
    %cst_19 = arith.constant dense<0.000000e+00> : vector<8x256xf32>
    %89 = tpu.matmul %88, %12, %cst_19 {dimension_numbers = #tpu.dot_dimension_numbers<[1], [0], [0], [1], [0, 0, 1, 1], [], []>} : vector<8x64xbf16>, vector<64x256xbf16>, vector<8x256xf32> -> vector<8x256xf32>
    %90 = arith.addf %87, %89 : vector<8x256xf32>
    %91 = math.tanh %90 : vector<8x256xf32>
    %cst_20 = arith.constant 5.000000e-01 : f32
    %92 = vector.broadcast %cst_20 : f32 to vector<8x256xf32>
    %93 = arith.mulf %92, %91 : vector<8x256xf32>
    %cst_21 = arith.constant 5.000000e-01 : f32
    %94 = vector.broadcast %cst_21 : f32 to vector<8x256xf32>
    %95 = arith.addf %93, %94 : vector<8x256xf32>
    %96 = arith.select %11, %91, %95 : vector<8x256xi1>, vector<8x256xf32>
    %97 = vector.extract_strided_slice %96 {offsets = [0, 0], sizes = [8, 64], strides = [1, 1]} : vector<8x256xf32> to vector<8x64xf32>
    %98 = vector.extract_strided_slice %96 {offsets = [0, 64], sizes = [8, 64], strides = [1, 1]} : vector<8x256xf32> to vector<8x64xf32>
    %99 = vector.extract_strided_slice %96 {offsets = [0, 128], sizes = [8, 64], strides = [1, 1]} : vector<8x256xf32> to vector<8x64xf32>
    %100 = vector.extract_strided_slice %96 {offsets = [0, 192], sizes = [8, 64], strides = [1, 1]} : vector<8x256xf32> to vector<8x64xf32>
    %101 = arith.mulf %98, %84 : vector<8x64xf32>
    %102 = arith.mulf %97, %99 : vector<8x64xf32>
    %103 = arith.addf %101, %102 : vector<8x64xf32>
    %104 = math.tanh %103 : vector<8x64xf32>
    %105 = arith.mulf %100, %104 : vector<8x64xf32>
    %106 = vector.extract_strided_slice %5 {offsets = [40, 0], sizes = [8, 256], strides = [1, 1]} : vector<64x256xf32> to vector<8x256xf32>
    %107 = arith.truncf %105 : vector<8x64xf32> to vector<8x64xbf16>
    %cst_22 = arith.constant dense<0.000000e+00> : vector<8x256xf32>
    %108 = tpu.matmul %107, %12, %cst_22 {dimension_numbers = #tpu.dot_dimension_numbers<[1], [0], [0], [1], [0, 0, 1, 1], [], []>} : vector<8x64xbf16>, vector<64x256xbf16>, vector<8x256xf32> -> vector<8x256xf32>
    %109 = arith.addf %106, %108 : vector<8x256xf32>
    %110 = math.tanh %109 : vector<8x256xf32>
    %cst_23 = arith.constant 5.000000e-01 : f32
    %111 = vector.broadcast %cst_23 : f32 to vector<8x256xf32>
    %112 = arith.mulf %111, %110 : vector<8x256xf32>
    %cst_24 = arith.constant 5.000000e-01 : f32
    %113 = vector.broadcast %cst_24 : f32 to vector<8x256xf32>
    %114 = arith.addf %112, %113 : vector<8x256xf32>
    %115 = arith.select %11, %110, %114 : vector<8x256xi1>, vector<8x256xf32>
    %116 = vector.extract_strided_slice %115 {offsets = [0, 0], sizes = [8, 64], strides = [1, 1]} : vector<8x256xf32> to vector<8x64xf32>
    %117 = vector.extract_strided_slice %115 {offsets = [0, 64], sizes = [8, 64], strides = [1, 1]} : vector<8x256xf32> to vector<8x64xf32>
    %118 = vector.extract_strided_slice %115 {offsets = [0, 128], sizes = [8, 64], strides = [1, 1]} : vector<8x256xf32> to vector<8x64xf32>
    %119 = vector.extract_strided_slice %115 {offsets = [0, 192], sizes = [8, 64], strides = [1, 1]} : vector<8x256xf32> to vector<8x64xf32>
    %120 = arith.mulf %117, %103 : vector<8x64xf32>
    %121 = arith.mulf %116, %118 : vector<8x64xf32>
    %122 = arith.addf %120, %121 : vector<8x64xf32>
    %123 = math.tanh %122 : vector<8x64xf32>
    %124 = arith.mulf %119, %123 : vector<8x64xf32>
    %125 = vector.extract_strided_slice %5 {offsets = [48, 0], sizes = [8, 256], strides = [1, 1]} : vector<64x256xf32> to vector<8x256xf32>
    %126 = arith.truncf %124 : vector<8x64xf32> to vector<8x64xbf16>
    %cst_25 = arith.constant dense<0.000000e+00> : vector<8x256xf32>
    %127 = tpu.matmul %126, %12, %cst_25 {dimension_numbers = #tpu.dot_dimension_numbers<[1], [0], [0], [1], [0, 0, 1, 1], [], []>} : vector<8x64xbf16>, vector<64x256xbf16>, vector<8x256xf32> -> vector<8x256xf32>
    %128 = arith.addf %125, %127 : vector<8x256xf32>
    %129 = math.tanh %128 : vector<8x256xf32>
    %cst_26 = arith.constant 5.000000e-01 : f32
    %130 = vector.broadcast %cst_26 : f32 to vector<8x256xf32>
    %131 = arith.mulf %130, %129 : vector<8x256xf32>
    %cst_27 = arith.constant 5.000000e-01 : f32
    %132 = vector.broadcast %cst_27 : f32 to vector<8x256xf32>
    %133 = arith.addf %131, %132 : vector<8x256xf32>
    %134 = arith.select %11, %129, %133 : vector<8x256xi1>, vector<8x256xf32>
    %135 = vector.extract_strided_slice %134 {offsets = [0, 0], sizes = [8, 64], strides = [1, 1]} : vector<8x256xf32> to vector<8x64xf32>
    %136 = vector.extract_strided_slice %134 {offsets = [0, 64], sizes = [8, 64], strides = [1, 1]} : vector<8x256xf32> to vector<8x64xf32>
    %137 = vector.extract_strided_slice %134 {offsets = [0, 128], sizes = [8, 64], strides = [1, 1]} : vector<8x256xf32> to vector<8x64xf32>
    %138 = vector.extract_strided_slice %134 {offsets = [0, 192], sizes = [8, 64], strides = [1, 1]} : vector<8x256xf32> to vector<8x64xf32>
    %139 = arith.mulf %136, %122 : vector<8x64xf32>
    %140 = arith.mulf %135, %137 : vector<8x64xf32>
    %141 = arith.addf %139, %140 : vector<8x64xf32>
    %142 = math.tanh %141 : vector<8x64xf32>
    %143 = arith.mulf %138, %142 : vector<8x64xf32>
    %144 = vector.extract_strided_slice %5 {offsets = [56, 0], sizes = [8, 256], strides = [1, 1]} : vector<64x256xf32> to vector<8x256xf32>
    %145 = arith.truncf %143 : vector<8x64xf32> to vector<8x64xbf16>
    %cst_28 = arith.constant dense<0.000000e+00> : vector<8x256xf32>
    %146 = tpu.matmul %145, %12, %cst_28 {dimension_numbers = #tpu.dot_dimension_numbers<[1], [0], [0], [1], [0, 0, 1, 1], [], []>} : vector<8x64xbf16>, vector<64x256xbf16>, vector<8x256xf32> -> vector<8x256xf32>
    %147 = arith.addf %144, %146 : vector<8x256xf32>
    %148 = math.tanh %147 : vector<8x256xf32>
    %cst_29 = arith.constant 5.000000e-01 : f32
    %149 = vector.broadcast %cst_29 : f32 to vector<8x256xf32>
    %150 = arith.mulf %149, %148 : vector<8x256xf32>
    %cst_30 = arith.constant 5.000000e-01 : f32
    %151 = vector.broadcast %cst_30 : f32 to vector<8x256xf32>
    %152 = arith.addf %150, %151 : vector<8x256xf32>
    %153 = arith.select %11, %148, %152 : vector<8x256xi1>, vector<8x256xf32>
    %154 = vector.extract_strided_slice %153 {offsets = [0, 0], sizes = [8, 64], strides = [1, 1]} : vector<8x256xf32> to vector<8x64xf32>
    %155 = vector.extract_strided_slice %153 {offsets = [0, 64], sizes = [8, 64], strides = [1, 1]} : vector<8x256xf32> to vector<8x64xf32>
    %156 = vector.extract_strided_slice %153 {offsets = [0, 128], sizes = [8, 64], strides = [1, 1]} : vector<8x256xf32> to vector<8x64xf32>
    %157 = vector.extract_strided_slice %153 {offsets = [0, 192], sizes = [8, 64], strides = [1, 1]} : vector<8x256xf32> to vector<8x64xf32>
    %158 = arith.mulf %155, %141 : vector<8x64xf32>
    %159 = arith.mulf %154, %156 : vector<8x64xf32>
    %160 = arith.addf %158, %159 : vector<8x64xf32>
    %161 = math.tanh %160 : vector<8x64xf32>
    %162 = arith.mulf %157, %161 : vector<8x64xf32>
    %163 = arith.truncf %162 : vector<8x64xf32> to vector<8x64xbf16>
    %c0_31 = arith.constant 0 : index
    %c0_32 = arith.constant 0 : index
    %164 = vector.load %arg4[%c0_31, %c0_32] : memref<64x32xbf16, #tpu.memory_space<vmem>>, vector<64x32xbf16>
    %cst_33 = arith.constant dense<0.000000e+00> : vector<8x32xf32>
    %165 = tpu.matmul %163, %164, %cst_33 {dimension_numbers = #tpu.dot_dimension_numbers<[1], [0], [0], [1], [0, 0, 1, 1], [], []>} : vector<8x64xbf16>, vector<64x32xbf16>, vector<8x32xf32> -> vector<8x32xf32>
    %c0_34 = arith.constant 0 : index
    %c0_35 = arith.constant 0 : index
    %166 = vector.load %arg5[%c0_34, %c0_35] : memref<1x32xf32, #tpu.memory_space<vmem>>, vector<1x32xf32>
    %167 = vector.broadcast %166 : vector<1x32xf32> to vector<8x32xf32>
    %168 = arith.addf %165, %167 : vector<8x32xf32>
    %cst_36 = arith.constant 0.000000e+00 : f32
    %169 = vector.broadcast %cst_36 : f32 to vector<8x32xf32>
    %170 = arith.maximumf %168, %169 : vector<8x32xf32>
    %171 = arith.truncf %170 : vector<8x32xf32> to vector<8x32xbf16>
    %c0_37 = arith.constant 0 : index
    %c0_38 = arith.constant 0 : index
    %172 = vector.load %arg6[%c0_37, %c0_38] : memref<32x2xbf16, #tpu.memory_space<vmem>>, vector<32x2xbf16>
    %cst_39 = arith.constant dense<0.000000e+00> : vector<8x2xf32>
    %173 = tpu.matmul %171, %172, %cst_39 {dimension_numbers = #tpu.dot_dimension_numbers<[1], [0], [0], [1], [0, 0, 1, 1], [], []>} : vector<8x32xbf16>, vector<32x2xbf16>, vector<8x2xf32> -> vector<8x2xf32>
    %c0_40 = arith.constant 0 : index
    %c0_41 = arith.constant 0 : index
    %174 = vector.load %arg7[%c0_40, %c0_41] : memref<1x2xf32, #tpu.memory_space<vmem>>, vector<1x2xf32>
    %175 = vector.broadcast %174 : vector<1x2xf32> to vector<8x2xf32>
    %176 = arith.addf %173, %175 : vector<8x2xf32>
    %c0_42 = arith.constant 0 : index
    %c0_43 = arith.constant 0 : index
    %177 = vector.load %arg8[%c0_42, %c0_43] : memref<8x2xf32, #tpu.memory_space<vmem>>, vector<8x2xf32>
    tpu.vector_store %arg8[%c0_42, %c0_43], %176 {strides = array<i32>} : memref<8x2xf32, #tpu.memory_space<vmem>>, vector<8x2xf32>,
    return
  }
}

</mosaic_0001>

<bundles_post_ra>
// kernel: tpu_custom_call.1
= control target key start
LH: loop header
LB: loop body
LE: loop exit
PB: predicated region body
PF: predicated region fallthrough
CT: control target
= control target key end

     0   :  { %13 = vsyncpa [#allocation3], 0  ;;  %s1498_s0 = inlined_call_operand.hbm [shape: bf16[64,64], index: 0, kind: input, shape index: {}]   ;;  %s1499_s1 = inlined_call_operand.vmem [shape: bf16[64,256], index: 1, kind: input, shape index: {}]   ;;  %s1500_s2 = inlined_call_operand.hbm [shape: bf16[64,256], index: 2, kind: input, shape index: {}]   ;;  %s1501_s3 = inlined_call_operand.hbm [shape: f32[1,256], index: 3, kind: input, shape index: {}]   ;;  %s1502_s4 = inlined_call_operand.vmem [shape: bf16[64,32], index: 4, kind: input, shape index: {}]   ;;  %s1503_s5 = inlined_call_operand.vmem [shape: f32[1,32], index: 5, kind: input, shape index: {}]   ;;  %s1504_s6 = inlined_call_operand.vmem [shape: bf16[32,2], index: 6, kind: input, shape index: {}]   ;;  %s1505_s7 = inlined_call_operand.vmem [shape: f32[1,2], index: 7, kind: input, shape index: {}]   ;;  %s1506_s8 = inlined_call_operand.vmem [shape: f32[8,2], index: 8, kind: output, shape index: {}]  }
   0x1   :  { %14 = vsyncpa [#allocation5], 0  ;;  %s1180_s27 = smov [#allocation4]   ;;  %s1110_s9 = scalar_lea.hbm %s1500_s2, 1024 }
   0x2   :  { %s34_s28 = sshll.u32 %s1180_s27, 4  ;;  %p1111_p0 = scmp.ne.s32.totalorder %s1500_s2, %s1110_s9  ;;  %s35_s28 = int_to_ptr.vmem [resolvable:$true] %s34_s28 }
   0x3   :  { %p1114_p1 = scmp.lt.u32.totalorder %s1110_s9, %s1500_s2 }
   0x5   :  { %p1116_p2 = pnand %p1114_p1, %p1111_p0 }
   0x7   :  { %1119 = shalt.err (!%p1116_p2)
}
   0x8   :  { %s1120_s14 = scalar_lea.vmem %s35_s28, 1024  ;;  %p1125_p4 = scmp.lt.s32.totalorder %s35_s28, %s35_s28 }
   0x9   :  { %p1121_p3 = scmp.ne.s32.totalorder %s35_s28, %s1120_s14  ;;  %p1126_p5 = scmp.lt.s32.totalorder %s1120_s14, %s1120_s14 }
   0xb   :  { %p1127_p6 = por %p1126_p5, %p1125_p4 }
   0xd   :  { %p1128_p7 = pnand %p1127_p6, %p1121_p3 }
   0xf   :  { %1131 = shalt.err (!%p1128_p7)
}
  0x10   :  { %s1181_s15 = smov 128   ;;  %s1182_s16 = smov 8  }
  0x11   :  { %40 = dma.hbm_to_vmem [thread:$0]  %s1500_s2, 1024, %s35_s28, [#allocation5], %s1181_s15, %s1181_s15, %s1182_s16  }
  0x12   :  { %s1183_s19 = smov [#allocation2]   ;;  %s1132_s23 = scalar_lea.hbm %s1498_s0, 512 }
  0x13   :  { %s20_s20 = sshll.u32 %s1183_s19, 4  ;;  %p1133_p8 = scmp.ne.s32.totalorder %s1498_s0, %s1132_s23  ;;  %s21_s20 = int_to_ptr.vmem [resolvable:$true] %s20_s20 }
  0x14   :  { %p1136_p9 = scmp.lt.u32.totalorder %s1132_s23, %s1498_s0 }
  0x16   :  { %p1138_p10 = pnand %p1136_p9, %p1133_p8 }
  0x18   :  { %1141 = shalt.err (!%p1138_p10)
}
  0x19   :  { %s1142_s29 = scalar_lea.vmem %s21_s20, 512  ;;  %p1147_p12 = scmp.lt.s32.totalorder %s21_s20, %s21_s20 }
  0x1a   :  { %p1143_p11 = scmp.ne.s32.totalorder %s21_s20, %s1142_s29  ;;  %p1148_p13 = scmp.lt.s32.totalorder %s1142_s29, %s1142_s29 }
  0x1c   :  { %p1149_p0 = por %p1148_p13, %p1147_p12 }
  0x1e   :  { %p1150_p1 = pnand %p1149_p0, %p1143_p11 }
  0x20   :  { %1153 = shalt.err (!%p1150_p1)
}
  0x21   :  { %s1184_s2 = smov 64   ;;  %s1185_s28 = smov 4  }
  0x22   :  { %26 = dma.hbm_to_vmem [thread:$0]  %s1498_s0, 512, %s21_s20, [#allocation3], %s1184_s2, %s1184_s2, %s1185_s28  }
  0x23   :  { %s1186_s10 = smov [#allocation6]   ;;  %s1154_s14 = scalar_lea.hbm %s1501_s3, 32 }
  0x24   :  { %s47_s11 = sshll.u32 %s1186_s10, 4  ;;  %p1155_p2 = scmp.ne.s32.totalorder %s1501_s3, %s1154_s14  ;;  %s48_s11 = int_to_ptr.vmem [resolvable:$true] %s47_s11 }
  0x25   :  { %p1158_p3 = scmp.lt.u32.totalorder %s1154_s14, %s1501_s3 }
  0x27   :  { %p1160_p4 = pnand %p1158_p3, %p1155_p2 }
  0x29   :  { %1163 = shalt.err (!%p1160_p4)
}
  0x2a   :  { %s1164_s19 = scalar_lea.vmem %s48_s11, 32  ;;  %p1169_p6 = scmp.lt.s32.totalorder %s48_s11, %s48_s11 }
  0x2b   :  { %p1165_p5 = scmp.ne.s32.totalorder %s48_s11, %s1164_s19  ;;  %p1170_p7 = scmp.lt.s32.totalorder %s1164_s19, %s1164_s19 }
  0x2d   :  { %p1171_p8 = por %p1170_p7, %p1169_p6 }
  0x2f   :  { %p1172_p9 = pnand %p1171_p8, %p1165_p5 }
  0x31   :  { %1175 = shalt.err (!%p1172_p9)
}
  0x32   :  { %50 = dma.hbm_to_vmem [thread:$0]  %s1501_s3, 32, %s48_s11, [#allocation5]  }
  0x33   :  { %1176 = dma.done.wait [#allocation3], 512  }
  0x34   :  { %1177 = vsyncadd [#allocation3], 4294966784 }
  0x35   :  { %1178 = dma.done.wait [#allocation5], 1056  }
  0x36   :  { %1179 = vsyncadd [#allocation5], 4294966240  ;;  %v1187_v0 = vmov 0   ;;  %v1028_v1 = vld [vmem:[%s1499_s1 + $0x4] ss:$8 sps:$4 sm:$0xff]   ;;  %vm157_vm0 = vcmask 523264   ;;  %v87_v10 = vlaneseq }
  0x37   :  { %202 = vmatprep.mubr.bf16.mxu0 %v1187_v0  ;;  %356 = vmatprep.mubr.bf16.mxu1 %v1187_v0  ;;  %v1030_v2 = vld [vmem:[%s1499_s1] ss:$8 sps:$4 sm:$0xff]   ;;  %v1031_v3 = vld [vmem:[%s1499_s1 + $0x14] ss:$8 sps:$4 sm:$0xff]   ;;  %v1033_v4 = vld [vmem:[%s1499_s1 + $0x10] ss:$8 sps:$4 sm:$0xff]  }
  0x38   :  { %170 = vmatprep.subr.bf16.mxu0 %v1028_v1  ;;  %v1034_v5 = vld [vmem:[%s1499_s1 + $0x24] ss:$8 sps:$4 sm:$0xff]   ;;  %v1036_v6 = vld [vmem:[%s1499_s1 + $0x20] ss:$8 sps:$4 sm:$0xff]   ;;  %v1037_v7 = vld [vmem:[%s1499_s1 + $0x34] ss:$8 sps:$4 sm:$0xff]  }
  0x39   :  { %171 = vmatpush1.bf16.msra.mxu0 %v1030_v2  ;;  %v1039_v8 = vld [vmem:[%s1499_s1 + $0x30] ss:$8 sps:$4 sm:$0xff]   ;;  %v1040_v9 = vld [vmem:[#allocation2] sm:$0xff]   ;;  %v88_v11 = vshrl.u32 %v87_v10, 7  ;;  %v244_v23 = vand.u32 127, %v87_v10  ;;  %v1053_v1 = vld [vmem:[#allocation2 + $0x8] sm:$0xff]  }
  0x3a   :  { %172 = vmatprep.subr.bf16.mxu0 %v1031_v3  ;;  %v85_v13 = vld [vmem:[#allocation6] sm:$0x3]  ;;  %v1313_v33 = vld [vmem:[#allocation4 + $0x4] ss:$8 sps:$4 sm:$0xff]   ;;  %v1317_v35 = vld [vmem:[#allocation4 + $0x14] ss:$8 sps:$4 sm:$0xff]  }
  0x3b   :  { %v89_v12 = vsub.s32 0, %v88_v11  ;;  %v93_v14 = vsub.s32 1, %v88_v11  ;;  %v1307_v24 = vadd.s32 128, %v244_v23  ;;  %v1315_v34 = vld [vmem:[#allocation4] ss:$8 sps:$4 sm:$0xff]   ;;  %324 = vmatprep.subr.bf16.mxu1 %v1313_v33  ;;  %vm1189_vm2 = vmmov 0  }
  0x3c   :  { %325 = vmatpush1.bf16.msra.mxu1 %v1315_v34  ;;  %v1322_v36 = vld [vmem:[#allocation4 + $0x10] ss:$8 sps:$4 sm:$0xff]   ;;  %v1326_v37 = vld [vmem:[#allocation4 + $0x24] ss:$8 sps:$4 sm:$0xff]   ;;  %v1330_v38 = vld [vmem:[#allocation4 + $0x20] ss:$8 sps:$4 sm:$0xff]  }
  0x3d   :  { %173 = vmatpush1.bf16.msra.mxu0 %v1033_v4  ;;  %v1301_v15 = vrot.slane %v85_v13, %v89_v12  ;;  %v1303_v16 = vrot.slane %v85_v13, %v93_v14  ;;  %vm249_vm1 = vcmp.lt.s32.totalorder %v1307_v24, 192  ;;  %326 = vmatprep.subr.bf16.mxu1 %v1317_v35  ;;  %v1334_v39 = vld [vmem:[#allocation4 + $0x34] ss:$8 sps:$4 sm:$0xff]   ;;  %v1338_v40 = vld [vmem:[#allocation4 + $0x30] ss:$8 sps:$4 sm:$0xff]   ;;  %vm897_vm3 = vcmask 261120  }
  0x3e   :  { %174 = vmatprep.subr.bf16.mxu0 %v1034_v5  ;;  %v1058_v24 = vld [vmem:[%s1502_s4 + $0x10] sm:$0xff]   ;;  %vm941_vm4 = vcmask 15360  }
  0x40   :  { %327 = vmatpush1.bf16.msra.mxu1 %v1322_v36 }
  0x41   :  { %175 = vmatpush1.bf16.msra.mxu0 %v1036_v6  ;;  %328 = vmatprep.subr.bf16.mxu1 %v1326_v37 }
  0x42   :  { %176 = vmatprep.subr.bf16.mxu0 %v1037_v7 }
  0x44   :  { %329 = vmatpush1.bf16.msra.mxu1 %v1330_v38 }
  0x45   :  { %177 = vmatpush1.bf16.msra.mxu0 %v1039_v8  ;;  %330 = vmatprep.subr.bf16.mxu1 %v1334_v39 }
  0x46   :  { %458 = vmatprep.subr.bf16.mxu0 %v1313_v33 }
  0x48   :  { %961 = vmatmul.mubr.msk.bf16.vlgmr.msra.gmra.mrb[0].mxu0 %vm157_vm0, %v1040_v9  ;;  %331 = vmatpush1.bf16.msra.mxu1 %v1338_v40 }
  0x49   :  { %212 = vmatprep.mubr.bf16.mxu0 %v1187_v0  ;;  %459 = vmatpush1.bf16.msra.mxu0 %v1315_v34 }
  0x4a   :  { %460 = vmatprep.subr.bf16.mxu0 %v1317_v35  ;;  %391 = vmatprep.subr.bf16.mxu1 %v1313_v33 }
  0x4d   :  { %461 = vmatpush1.bf16.msra.mxu0 %v1322_v36 }
  0x4e   :  { %462 = vmatprep.subr.bf16.mxu0 %v1326_v37 }
  0x50   :  { %962 = vmatmul.mubr.msk.bf16.gmra.mrb[4].mxu0 %vm157_vm0, %v1053_v1 }
  0x51   :  { %463 = vmatpush1.bf16.msra.mxu0 %v1330_v38  ;;  %222 = vmatprep.mubr.bf16.mxu0 %v1187_v0 }
  0x52   :  { %464 = vmatprep.subr.bf16.mxu0 %v1334_v39 }
  0x55   :  { %465 = vmatpush1.bf16.msra.mxu0 %v1338_v40 }
  0x56   :  { %592 = vmatprep.subr.bf16.mxu0 %v1313_v33 }
 0x11b   :  { %v204_v17 = vpop.f32.mrb[0].mxu0 }
 0x11c   :  { %v205_v18 = vadd.f32 %v204_v17, %v1301_v15  ;;  %v206_v19 = vpop.f32.mrb[1].mxu0 }
 0x11d   :  { %v207_v20 = vadd.f32 %v206_v19, %v1303_v16  ;;  %v208_v21 = vpop.f32.mrb[2].mxu0 }
 0x11e   :  { %1062 = vtanh.f32 %v205_v18  ;;  %v210_v22 = vpop.f32.mrb[3].mxu0  ;;  %v209_v48 = vadd.f32 %v208_v21, %v1301_v15 }
 0x11f   :  { %1064 = vtanh.f32 %v207_v20  ;;  %v211_v49 = vadd.f32 %v210_v22, %v1303_v16 }
 0x123   :  { %v214_v8 = vpop.f32.mrb[4].mxu0 }
 0x124   :  { %v216_v9 = vpop.f32.mrb[5].mxu0  ;;  %v215_v13 = vadd.f32 %v214_v8, %v1301_v15 }
 0x125   :  { %v1366_v10 = vpop.f32.mrb[6].mxu0  ;;  %v217_v14 = vadd.f32 %v216_v9, %v1303_v16 }
 0x126   :  { %v1368_v11 = vpop.f32.mrb[7].mxu0 }
 0x128   :  { %v1063_v25 = vpop.eup %1062 }
 0x129   :  { %v1065_v26 = vpop.eup %1064  ;;  %v262_v27 = vmul.f32 0.5, %v1063_v25 }
 0x12a   :  { %v263_v28 = vmul.f32 0.5, %v1065_v26 }
 0x12b   :  { %v264_v30 = vadd.f32 0.5, %v262_v27 }
 0x12c   :  { %v265_v29 = vadd.f32 0.5, %v263_v28 }
 0x12d   :  { %v268_v41 = vmul.f32 0.0, %v264_v30 }
 0x12e   :  { %v267_v31 = vsel %vm249_vm1, %v1065_v26, %v265_v29 }
 0x12f   :  { %v269_v32 = vmul.f32 %v267_v31, %v264_v30 }
 0x131   :  { %271 = vrot.lane.b32.xlu0 %v269_v32, %s1184_s2  ;;  %v1054_v32 = vld [vmem:[#allocation2 + $0x10] sm:$0xff]  }
 0x132   :  { %963 = vmatmul.mubr.msk.bf16.gmra.mrb[8].mxu0 %vm157_vm0, %v1054_v32 }
 0x133   :  { %232 = vmatprep.mubr.bf16.mxu0 %v1187_v0 }
 0x1a3   :  { %v272_v42 = vpop.permute.xlu0 %271 }
 0x1a4   :  { %v274_v43 = vadd.f32 %v272_v42, %v268_v41  ;;  %v1055_v41 = vld [vmem:[#allocation2 + $0x18] sm:$0xff]  }
 0x1a5   :  { %964 = vmatmul.mubr.msk.bf16.gmra.mrb[12].mxu0 %vm157_vm0, %v1055_v41 }
 0x1a6   :  { %1066 = vtanh.f32 %v274_v43  ;;  %490 = vmatprep.mubr.bf16.mxu0 %v1187_v0 }
 0x1b0   :  { %v1067_v44 = vpop.eup %1066 }
 0x1b1   :  { %v276_v45 = vmul.f32 %v1067_v44, %v267_v31 }
 0x1b3   :  { %v277_v46 = vpack.c.bf16 %v276_v45, %v276_v45 }
 0x1b5   :  { %279 = vrot.lane.b32.xlu0 %v277_v46, %s1184_s2 }
 0x227   :  { %v280_v47 = vpop.permute.xlu0 %279 }
 0x228   :  { %973 = vmatmul.mubr.msk.bf16.vlgmr.msra.gmra.mrb[0].mxu1 %vm157_vm0, %v280_v47 }
 0x229   :  { %392 = vmatpush1.bf16.msra.mxu1 %v1315_v34  ;;  %423 = vmatprep.mubr.bf16.mxu1 %v1187_v0 }
 0x22a   :  { %393 = vmatprep.subr.bf16.mxu1 %v1317_v35 }
 0x22d   :  { %394 = vmatpush1.bf16.msra.mxu1 %v1322_v36 }
 0x22e   :  { %395 = vmatprep.subr.bf16.mxu1 %v1326_v37 }
 0x231   :  { %396 = vmatpush1.bf16.msra.mxu1 %v1330_v38 }
 0x232   :  { %397 = vmatprep.subr.bf16.mxu1 %v1334_v39 }
 0x235   :  { %398 = vmatpush1.bf16.msra.mxu1 %v1338_v40 }
 0x236   :  { %525 = vmatprep.subr.bf16.mxu1 %v1313_v33 }
 0x2fb   :  { %v358_v50 = vpop.f32.mrb[0].mxu1 }
 0x2fc   :  { %v365_v51 = vadd.f32 %v358_v50, %v209_v48  ;;  %v360_v52 = vpop.f32.mrb[1].mxu1  ;;  %v224_v48 = vpop.f32.mrb[8].mxu0 }
 0x2fd   :  { %v366_v53 = vadd.f32 %v360_v52, %v211_v49  ;;  %v362_v54 = vpop.f32.mrb[2].mxu1  ;;  %v226_v49 = vpop.f32.mrb[9].mxu0 }
 0x2fe   :  { %1068 = vtanh.f32 %v365_v51  ;;  %v363_v55 = vpop.f32.mrb[3].mxu1  ;;  %v1390_v50 = vpop.f32.mrb[10].mxu0 }
 0x2ff   :  { %1070 = vtanh.f32 %v366_v53  ;;  %v1392_v51 = vpop.f32.mrb[11].mxu0 }
 0x300   :  { %v1394_v52 = vpop.f32.mrb[12].mxu0 }
 0x301   :  { %v1396_v53 = vpop.f32.mrb[13].mxu0 }
 0x302   :  { %v1398_v54 = vpop.f32.mrb[14].mxu0 }
 0x303   :  { %v1400_v55 = vpop.f32.mrb[15].mxu0 }
 0x308   :  { %v1069_v56 = vpop.eup %1068 }
 0x309   :  { %v1071_v57 = vpop.eup %1070  ;;  %v369_v58 = vmul.f32 0.5, %v1069_v56 }
 0x30a   :  { %v370_v59 = vmul.f32 0.5, %v1071_v57 }
 0x30b   :  { %v371_v61 = vadd.f32 0.5, %v369_v58  ;;  %v221_v58 = vadd.f32 %v1368_v11, %v1303_v16 }
 0x30c   :  { %v372_v60 = vadd.f32 0.5, %v370_v59 }
 0x30d   :  { %v375_v2 = vmul.f32 %v371_v61, %v274_v43 }
 0x30e   :  { %v374_v62 = vsel %vm249_vm1, %v1071_v57, %v372_v60  ;;  %v219_v57 = vadd.f32 %v1366_v10, %v1301_v15 }
 0x30f   :  { %v376_v63 = vmul.f32 %v374_v62, %v371_v61 }
 0x311   :  { %378 = vrot.lane.b32.xlu1 %v376_v63, %s1184_s2 }
 0x383   :  { %v379_v3 = vpop.permute.xlu1 %378 }
 0x384   :  { %v381_v4 = vadd.f32 %v379_v3, %v375_v2 }
 0x386   :  { %1072 = vtanh.f32 %v381_v4 }
 0x390   :  { %v1073_v5 = vpop.eup %1072 }
 0x391   :  { %v383_v6 = vmul.f32 %v1073_v5, %v374_v62 }
 0x393   :  { %v384_v7 = vpack.c.bf16 %v383_v6, %v383_v6 }
 0x395   :  { %386 = vrot.lane.b32.xlu1 %v384_v7, %s1184_s2 }
 0x407   :  { %v387_v12 = vpop.permute.xlu1 %386 }
 0x408   :  { %974 = vmatmul.mubr.msk.bf16.vlgmr.msra.gmra.mrb[4].mxu1 %vm157_vm0, %v387_v12 }
 0x409   :  { %526 = vmatpush1.bf16.msra.mxu1 %v1315_v34  ;;  %557 = vmatprep.mubr.bf16.mxu1 %v1187_v0 }
 0x40a   :  { %527 = vmatprep.subr.bf16.mxu1 %v1317_v35 }
 0x40d   :  { %528 = vmatpush1.bf16.msra.mxu1 %v1322_v36 }
 0x40e   :  { %529 = vmatprep.subr.bf16.mxu1 %v1326_v37 }
 0x411   :  { %530 = vmatpush1.bf16.msra.mxu1 %v1330_v38 }
 0x412   :  { %531 = vmatprep.subr.bf16.mxu1 %v1334_v39 }
 0x415   :  { %532 = vmatpush1.bf16.msra.mxu1 %v1338_v40 }
 0x416   :  { %659 = vmatprep.subr.bf16.mxu1 %v1313_v33 }
 0x4db   :  { %v425_v17 = vpop.f32.mrb[4].mxu1 }
 0x4dc   :  { %v432_v18 = vadd.f32 %v425_v17, %v215_v13  ;;  %v427_v19 = vpop.f32.mrb[5].mxu1 }
 0x4dd   :  { %v433_v20 = vadd.f32 %v427_v19, %v217_v14  ;;  %v429_v21 = vpop.f32.mrb[6].mxu1  ;;  %v227_v19 = vadd.f32 %v226_v49, %v1303_v16 }
 0x4de   :  { %1074 = vtanh.f32 %v432_v18  ;;  %v430_v22 = vpop.f32.mrb[7].mxu1  ;;  %v225_v18 = vadd.f32 %v224_v48, %v1301_v15 }
 0x4df   :  { %1076 = vtanh.f32 %v433_v20 }
 0x4e8   :  { %v1075_v23 = vpop.eup %1074 }
 0x4e9   :  { %v1077_v25 = vpop.eup %1076  ;;  %v436_v26 = vmul.f32 0.5, %v1075_v23 }
 0x4ea   :  { %v437_v27 = vmul.f32 0.5, %v1077_v25 }
 0x4eb   :  { %v438_v29 = vadd.f32 0.5, %v436_v26 }
 0x4ec   :  { %v439_v28 = vadd.f32 0.5, %v437_v27 }
 0x4ed   :  { %v442_v42 = vmul.f32 %v438_v29, %v381_v4 }
 0x4ee   :  { %v441_v30 = vsel %vm249_vm1, %v1077_v25, %v439_v28 }
 0x4ef   :  { %v443_v31 = vmul.f32 %v441_v30, %v438_v29 }
 0x4f1   :  { %445 = vrot.lane.b32.xlu0 %v443_v31, %s1184_s2 }
 0x563   :  { %v446_v43 = vpop.permute.xlu0 %445 }
 0x564   :  { %v448_v44 = vadd.f32 %v446_v43, %v442_v42 }
 0x566   :  { %1078 = vtanh.f32 %v448_v44 }
 0x570   :  { %v1079_v45 = vpop.eup %1078 }
 0x571   :  { %v450_v46 = vmul.f32 %v1079_v45, %v441_v30 }
 0x573   :  { %v451_v47 = vpack.c.bf16 %v450_v46, %v450_v46 }
 0x575   :  { %453 = vrot.lane.b32.xlu1 %v451_v47, %s1184_s2 }
 0x5e7   :  { %v454_v56 = vpop.permute.xlu1 %453 }
 0x5e8   :  { %975 = vmatmul.mubr.msk.bf16.vlgmr.msra.gmra.mrb[16].mxu0 %vm157_vm0, %v454_v56  ;;  %v229_v56 = vadd.f32 %v1390_v50, %v1301_v15 }
 0x5e9   :  { %593 = vmatpush1.bf16.msra.mxu0 %v1315_v34  ;;  %624 = vmatprep.mubr.bf16.mxu0 %v1187_v0 }
 0x5ea   :  { %594 = vmatprep.subr.bf16.mxu0 %v1317_v35 }
 0x5ed   :  { %595 = vmatpush1.bf16.msra.mxu0 %v1322_v36 }
 0x5ee   :  { %596 = vmatprep.subr.bf16.mxu0 %v1326_v37 }
 0x5f1   :  { %597 = vmatpush1.bf16.msra.mxu0 %v1330_v38 }
 0x5f2   :  { %598 = vmatprep.subr.bf16.mxu0 %v1334_v39 }
 0x5f5   :  { %599 = vmatpush1.bf16.msra.mxu0 %v1338_v40 }
 0x5f6   :  { %726 = vmatprep.subr.bf16.mxu0 %v1313_v33 }
 0x6bb   :  { %v492_v59 = vpop.f32.mrb[16].mxu0 }
 0x6bc   :  { %v499_v60 = vadd.f32 %v492_v59, %v219_v57  ;;  %v494_v61 = vpop.f32.mrb[17].mxu0 }
 0x6bd   :  { %v500_v62 = vadd.f32 %v494_v61, %v221_v58  ;;  %v496_v63 = vpop.f32.mrb[18].mxu0 }
 0x6be   :  { %1080 = vtanh.f32 %v499_v60  ;;  %v497_v1 = vpop.f32.mrb[19].mxu0 }
 0x6bf   :  { %1082 = vtanh.f32 %v500_v62 }
 0x6c8   :  { %v1081_v2 = vpop.eup %1080 }
 0x6c9   :  { %v1083_v3 = vpop.eup %1082  ;;  %v503_v4 = vmul.f32 0.5, %v1081_v2 }
 0x6ca   :  { %v504_v5 = vmul.f32 0.5, %v1083_v3 }
 0x6cb   :  { %v505_v33 = vadd.f32 0.5, %v503_v4 }
 0x6cc   :  { %v506_v6 = vadd.f32 0.5, %v504_v5 }
 0x6cd   :  { %v509_v9 = vmul.f32 %v505_v33, %v448_v44 }
 0x6ce   :  { %v508_v7 = vsel %vm249_vm1, %v1083_v3, %v506_v6  ;;  %v235_v6 = vadd.f32 %v1394_v52, %v1301_v15 }
 0x6cf   :  { %v510_v8 = vmul.f32 %v508_v7, %v505_v33  ;;  %v237_v33 = vadd.f32 %v1396_v53, %v1303_v16 }
 0x6d1   :  { %512 = vrot.lane.b32.xlu0 %v510_v8, %s1184_s2 }
 0x743   :  { %v513_v10 = vpop.permute.xlu0 %512 }
 0x744   :  { %v515_v11 = vadd.f32 %v513_v10, %v509_v9 }
 0x746   :  { %1084 = vtanh.f32 %v515_v11 }
 0x750   :  { %v1085_v12 = vpop.eup %1084 }
 0x751   :  { %v517_v13 = vmul.f32 %v1085_v12, %v508_v7 }
 0x753   :  { %v518_v14 = vpack.c.bf16 %v517_v13, %v517_v13 }
 0x755   :  { %520 = vrot.lane.b32.xlu1 %v518_v14, %s1184_s2 }
 0x7c7   :  { %v521_v17 = vpop.permute.xlu1 %520 }
 0x7c8   :  { %976 = vmatmul.mubr.msk.bf16.vlgmr.msra.gmra.mrb[8].mxu1 %vm157_vm0, %v521_v17 }
 0x7c9   :  { %660 = vmatpush1.bf16.msra.mxu1 %v1315_v34  ;;  %691 = vmatprep.mubr.bf16.mxu1 %v1187_v0 }
 0x7ca   :  { %661 = vmatprep.subr.bf16.mxu1 %v1317_v35 }
 0x7cd   :  { %662 = vmatpush1.bf16.msra.mxu1 %v1322_v36 }
 0x7ce   :  { %663 = vmatprep.subr.bf16.mxu1 %v1326_v37 }
 0x7d1   :  { %664 = vmatpush1.bf16.msra.mxu1 %v1330_v38 }
 0x7d2   :  { %665 = vmatprep.subr.bf16.mxu1 %v1334_v39 }
 0x7d5   :  { %666 = vmatpush1.bf16.msra.mxu1 %v1338_v40 }
 0x89b   :  { %v559_v20 = vpop.f32.mrb[8].mxu1 }
 0x89c   :  { %v566_v21 = vadd.f32 %v559_v20, %v225_v18  ;;  %v561_v22 = vpop.f32.mrb[9].mxu1 }
 0x89d   :  { %v567_v23 = vadd.f32 %v561_v22, %v227_v19  ;;  %v563_v25 = vpop.f32.mrb[10].mxu1 }
 0x89e   :  { %1086 = vtanh.f32 %v566_v21  ;;  %v564_v26 = vpop.f32.mrb[11].mxu1 }
 0x89f   :  { %1088 = vtanh.f32 %v567_v23 }
 0x8a8   :  { %v1087_v27 = vpop.eup %1086 }
 0x8a9   :  { %v1089_v28 = vpop.eup %1088  ;;  %v570_v29 = vmul.f32 0.5, %v1087_v27 }
 0x8aa   :  { %v571_v30 = vmul.f32 0.5, %v1089_v28 }
 0x8ab   :  { %v572_v32 = vadd.f32 0.5, %v570_v29  ;;  %v239_v29 = vadd.f32 %v1398_v54, %v1301_v15 }
 0x8ac   :  { %v573_v31 = vadd.f32 0.5, %v571_v30  ;;  %v241_v30 = vadd.f32 %v1400_v55, %v1303_v16  ;;  %v1188_v55 = vmov 0.0  }
 0x8ad   :  { %v576_v43 = vmul.f32 %v572_v32, %v515_v11  ;;  %998 = vmatprep.subr.bf16.mxu1 %v1188_v55 }
 0x8ae   :  { %v575_v41 = vsel %vm249_vm1, %v1089_v28, %v573_v31 }
 0x8af   :  { %v577_v42 = vmul.f32 %v575_v41, %v572_v32 }
 0x8b1   :  { %579 = vrot.lane.b32.xlu0 %v577_v42, %s1184_s2 }
 0x923   :  { %v580_v44 = vpop.permute.xlu0 %579 }
 0x924   :  { %v582_v45 = vadd.f32 %v580_v44, %v576_v43 }
 0x926   :  { %1090 = vtanh.f32 %v582_v45 }
 0x930   :  { %v1091_v46 = vpop.eup %1090 }
 0x931   :  { %v584_v47 = vmul.f32 %v1091_v46, %v575_v41 }
 0x933   :  { %v585_v48 = vpack.c.bf16 %v584_v47, %v584_v47 }
 0x935   :  { %587 = vrot.lane.b32.xlu1 %v585_v48, %s1184_s2 }
 0x9a7   :  { %v588_v49 = vpop.permute.xlu1 %587 }
 0x9a8   :  { %977 = vmatmul.mubr.msk.bf16.vlgmr.msra.gmra.mrb[20].mxu0 %vm157_vm0, %v588_v49 }
 0x9a9   :  { %727 = vmatpush1.bf16.msra.mxu0 %v1315_v34  ;;  %758 = vmatprep.mubr.bf16.mxu0 %v1187_v0  ;;  %v231_v34 = vadd.f32 %v1392_v51, %v1303_v16  ;;  %v1056_v16 = vld [vmem:[%s1502_s4] sm:$0xff]  }
 0x9aa   :  { %728 = vmatprep.subr.bf16.mxu0 %v1317_v35 }
 0x9ad   :  { %729 = vmatpush1.bf16.msra.mxu0 %v1322_v36 }
 0x9ae   :  { %730 = vmatprep.subr.bf16.mxu0 %v1326_v37 }
 0x9b1   :  { %731 = vmatpush1.bf16.msra.mxu0 %v1330_v38 }
 0x9b2   :  { %732 = vmatprep.subr.bf16.mxu0 %v1334_v39 }
 0x9b5   :  { %733 = vmatpush1.bf16.msra.mxu0 %v1338_v40 }
 0x9b6   :  { %1010 = vmatprep.subr.bf16.mxu0 %v1188_v55 }
 0xa7b   :  { %v626_v57 = vpop.f32.mrb[20].mxu0 }
 0xa7c   :  { %v633_v0 = vadd.f32 %v626_v57, %v229_v56  ;;  %v628_v58 = vpop.f32.mrb[21].mxu0  ;;  %v1059_v57 = vld [vmem:[%s1502_s4 + $0x18] sm:$0xff]  }
 0xa7d   :  { %v634_v35 = vadd.f32 %v628_v58, %v231_v34  ;;  %v630_v59 = vpop.f32.mrb[22].mxu0  ;;  %v1057_v34 = vld [vmem:[%s1502_s4 + $0x8] sm:$0xff]  }
 0xa7e   :  { %1092 = vtanh.f32 %v633_v0  ;;  %v631_v36 = vpop.f32.mrb[23].mxu0  ;;  %v1060_v59 = vld [vmem:[%s1504_s6] sm:$0xff]  }
 0xa7f   :  { %1094 = vtanh.f32 %v634_v35 }
 0xa88   :  { %v1093_v37 = vpop.eup %1092 }
 0xa89   :  { %v1095_v38 = vpop.eup %1094  ;;  %v637_v60 = vmul.f32 0.5, %v1093_v37 }
 0xa8a   :  { %v638_v39 = vmul.f32 0.5, %v1095_v38 }
 0xa8b   :  { %v639_v40 = vadd.f32 0.5, %v637_v60 }
 0xa8c   :  { %v640_v61 = vadd.f32 0.5, %v638_v39  ;;  %v1061_v39 = vld [vmem:[%s1504_s6 + $0x8] sm:$0xff]  }
 0xa8d   :  { %v643_v51 = vmul.f32 %v639_v40, %v582_v45 }
 0xa8e   :  { %v642_v50 = vsel %vm249_vm1, %v1095_v38, %v640_v61  ;;  %v980_v61 = vld [vmem:[%s1503_s5] ss:$0 sm:$0xff] }
 0xa8f   :  { %v644_v62 = vmul.f32 %v642_v50, %v639_v40 }
 0xa91   :  { %646 = vrot.lane.b32.xlu0 %v644_v62, %s1184_s2 }
 0xb03   :  { %v647_v63 = vpop.permute.xlu0 %646 }
 0xb04   :  { %v649_v1 = vadd.f32 %v647_v63, %v643_v51 }
 0xb06   :  { %1096 = vtanh.f32 %v649_v1 }
 0xb10   :  { %v1097_v2 = vpop.eup %1096 }
 0xb11   :  { %v651_v3 = vmul.f32 %v1097_v2, %v642_v50 }
 0xb13   :  { %v652_v4 = vpack.c.bf16 %v651_v3, %v651_v3  ;;  %v986_v3 = vld [vmem:[%s1505_s7] ss:$0 sm:$0xff] }
 0xb15   :  { %654 = vrot.lane.b32.xlu1 %v652_v4, %s1184_s2 }
 0xb87   :  { %v655_v5 = vpop.permute.xlu1 %654 }
 0xb88   :  { %978 = vmatmul.mubr.msk.bf16.vlgmr.msra.gmra.mrb[12].mxu1 %vm157_vm0, %v655_v5 }
 0xb89   :  { %1006 = vmatprep.mubr.msk.bf16.mxu1 %vm1189_vm2, %v1188_v55  ;;  %999 = vmatpush3.bf16.msra.mxu1 %v1056_v16 }
 0xb8a   :  { %1000 = vmatprep.subr.bf16.mxu1 %v1188_v55 }
 0xb8d   :  { %1001 = vmatpush3.bf16.msra.mxu1 %v1057_v34 }
 0xb8e   :  { %1002 = vmatprep.subr.bf16.mxu1 %v1188_v55 }
 0xb91   :  { %1003 = vmatpush3.bf16.msra.mxu1 %v1058_v24 }
 0xb92   :  { %1004 = vmatprep.subr.bf16.mxu1 %v1188_v55 }
 0xb95   :  { %1005 = vmatpush3.bf16.msra.mxu1 %v1059_v57 }
 0xc5b   :  { %v693_v7 = vpop.f32.mrb[12].mxu1 }
 0xc5c   :  { %v700_v8 = vadd.f32 %v693_v7, %v235_v6  ;;  %v695_v9 = vpop.f32.mrb[13].mxu1 }
 0xc5d   :  { %v701_v10 = vadd.f32 %v695_v9, %v237_v33  ;;  %v697_v11 = vpop.f32.mrb[14].mxu1 }
 0xc5e   :  { %1098 = vtanh.f32 %v700_v8  ;;  %v698_v12 = vpop.f32.mrb[15].mxu1 }
 0xc5f   :  { %1100 = vtanh.f32 %v701_v10 }
 0xc68   :  { %v1099_v13 = vpop.eup %1098 }
 0xc69   :  { %v1101_v14 = vpop.eup %1100  ;;  %v704_v17 = vmul.f32 0.5, %v1099_v13 }
 0xc6a   :  { %v705_v18 = vmul.f32 0.5, %v1101_v14 }
 0xc6b   :  { %v706_v20 = vadd.f32 0.5, %v704_v17 }
 0xc6c   :  { %v707_v19 = vadd.f32 0.5, %v705_v18 }
 0xc6d   :  { %v710_v53 = vmul.f32 %v706_v20, %v649_v1 }
 0xc6e   :  { %v709_v52 = vsel %vm249_vm1, %v1101_v14, %v707_v19 }
 0xc6f   :  { %v711_v21 = vmul.f32 %v709_v52, %v706_v20 }
 0xc71   :  { %713 = vrot.lane.b32.xlu0 %v711_v21, %s1184_s2 }
 0xce3   :  { %v714_v22 = vpop.permute.xlu0 %713 }
 0xce4   :  { %v716_v23 = vadd.f32 %v714_v22, %v710_v53 }
 0xce6   :  { %1102 = vtanh.f32 %v716_v23 }
 0xcf0   :  { %v1103_v25 = vpop.eup %1102 }
 0xcf1   :  { %v718_v26 = vmul.f32 %v1103_v25, %v709_v52 }
 0xcf3   :  { %v719_v27 = vpack.c.bf16 %v718_v26, %v718_v26 }
 0xcf5   :  { %721 = vrot.lane.b32.xlu1 %v719_v27, %s1184_s2 }
 0xd67   :  { %v722_v28 = vpop.permute.xlu1 %721 }
 0xd68   :  { %979 = vmatmul.mubr.msk.bf16.vlgmr.msra.gmra.mrb[24].mxu0 %vm157_vm0, %v722_v28 }
 0xd69   :  { %1014 = vmatprep.mubr.msk.bf16.mxu0 %vm1189_vm2, %v1188_v55  ;;  %1011 = vmatpush3.bf16.msra.mxu0 %v1060_v59 }
 0xd6a   :  { %1012 = vmatprep.subr.bf16.mxu0 %v1188_v55 }
 0xd6d   :  { %1013 = vmatpush3.bf16.msra.mxu0 %v1061_v39 }
 0xe3b   :  { %v760_v31 = vpop.f32.mrb[24].mxu0 }
 0xe3c   :  { %v767_v32 = vadd.f32 %v760_v31, %v239_v29  ;;  %v762_v41 = vpop.f32.mrb[25].mxu0 }
 0xe3d   :  { %v768_v42 = vadd.f32 %v762_v41, %v241_v30  ;;  %v764_v43 = vpop.f32.mrb[26].mxu0 }
 0xe3e   :  { %1104 = vtanh.f32 %v767_v32  ;;  %v765_v44 = vpop.f32.mrb[27].mxu0 }
 0xe3f   :  { %1106 = vtanh.f32 %v768_v42 }
 0xe48   :  { %v1105_v45 = vpop.eup %1104 }
 0xe49   :  { %v1107_v46 = vpop.eup %1106  ;;  %v771_v47 = vmul.f32 0.5, %v1105_v45 }
 0xe4a   :  { %v772_v48 = vmul.f32 0.5, %v1107_v46 }
 0xe4b   :  { %v773_v56 = vadd.f32 0.5, %v771_v47 }
 0xe4c   :  { %v774_v49 = vadd.f32 0.5, %v772_v48 }
 0xe4d   :  { %v777_v0 = vmul.f32 %v773_v56, %v716_v23 }
 0xe4e   :  { %v776_v15 = vsel %vm249_vm1, %v1107_v46, %v774_v49 }
 0xe4f   :  { %v778_v54 = vmul.f32 %v776_v15, %v773_v56 }
 0xe51   :  { %780 = vrot.lane.b32.xlu0 %v778_v54, %s1184_s2 }
 0xec3   :  { %v781_v58 = vpop.permute.xlu0 %780 }
 0xec4   :  { %v783_v35 = vadd.f32 %v781_v58, %v777_v0 }
 0xec6   :  { %1108 = vtanh.f32 %v783_v35 }
 0xed0   :  { %v1109_v36 = vpop.eup %1108 }
 0xed1   :  { %v785_v37 = vmul.f32 %v1109_v36, %v776_v15 }
 0xed3   :  { %v786_v38 = vpack.c.bf16 %v785_v37, %v785_v37 }
 0xed5   :  { %803 = vrot.lane.b32.xlu1 %v786_v38, %s1184_s2 }
 0xf47   :  { %v804_v60 = vpop.permute.xlu1 %803 }
 0xf48   :  { %1007 = vmatmul.mubr.msk.bf16.vlgmr.msra.gmra.mrb[16].mxu1 %vm157_vm0, %v804_v60 }
0x101b   :  { %v866_v40 = vpop.f32.mrb[16].mxu1 }
0x101c   :  { %v867_v50 = vadd.f32 %v980_v61, %v866_v40  ;;  %v1008_v62 = vpop.f32.mrb[17].mxu1 }
0x101d   :  { %v869_v51 = vpop.f32.mrb[18].mxu1 }
0x101e   :  { %v872_v63 = vmax.f32 %v867_v50, 0.0  ;;  %v1009_v1 = vpop.f32.mrb[19].mxu1 }
0x1020   :  { %v873_v2 = vpack.c.bf16 %v872_v63, %v872_v63 }
0x1022   :  { %1015 = vmatmul.mubr.msk.bf16.vlgmr.msra.gmra.mrb[28].mxu0 %vm897_vm3, %v873_v2 }
0x10f5   :  { %v935_v4 = vpop.f32.mrb[28].mxu0 }
0x10f6   :  { %v936_v5 = vadd.f32 %v986_v3, %v935_v4  ;;  %v1016_v6 = vpop.f32.mrb[29].mxu0 }
0x10f7   :  { %v938_v33 = vpop.f32.mrb[30].mxu0 }
0x10f8   :  { %942 = vst.msk [vmem:[%s1506_s8] sm:$0xff] %vm941_vm4, %v936_v5  ;;  %v1017_v7 = vpop.f32.mrb[31].mxu0 }
0x10f9   :  { %947 = vsyncpa [#allocation3], 1 }
0x10fa   :  { %948 = vsyncpa [#allocation5], 1 }

</bundles_post_ra>
